<compile_context>
chip_gen: v6e
topology: v6e:2x2x1
jax: 0.10.0
libtpu: 0.0.40
codegen_flags: <defaults>
</compile_context>

<pallas_src>
import jax
import jax.numpy as jnp
from jax.experimental import pallas as pl
from jax.experimental.pallas import tpu as pltpu


def _round_up(n, m):
    return ((n + m - 1) // m) * m


def _jointv_kernel(x_ref, w1_ref, b1_ref, w2_ref, b2_ref, wv_ref, bv_ref, o_ref):
    # x tile: (TBw, 128) — 4 batch rows packed per 128-lane row.
    x = x_ref[...]
    if x.dtype != jnp.bfloat16:          # no-op when x is streamed bf16
        x = x.astype(jnp.bfloat16)

    # Layer 1: (TBw,128) @ (128,64) block-diag, f32 accumulate, bias + ReLU.
    h1 = jnp.dot(x, w1_ref[...], preferred_element_type=jnp.float32) + b1_ref[...]
    h1 = jnp.maximum(h1, 0.0)

    # Layer 2: (TBw,64) @ (64,128) block-diag.
    h2 = jnp.dot(h1.astype(jnp.bfloat16), w2_ref[...],
                 preferred_element_type=jnp.float32) + b2_ref[...]
    h2 = jnp.maximum(h2, 0.0)

    # Head: (TBw,128) @ (128,4) block-diag — one value per packed batch row.
    # MXU has ample slack in this HBM-bound regime, and this avoids any
    # lane-group reduce / relayout before the store.
    v = jnp.dot(h2.astype(jnp.bfloat16), wv_ref[...],
                preferred_element_type=jnp.float32) + bv_ref[...]

    o_ref[...] = jax.nn.sigmoid(v).astype(o_ref.dtype)


def pack_params(params, lanes=128):
    """Block-diagonalize the tiny Linear weights so `pack` batch rows share the
    128-lane vreg width.  Do this once, outside the hot path."""
    w1, b1 = params["w1"], params["b1"]
    w2, b2 = params["w2"], params["b2"]
    wv, bv = params["wv"], params["bv"]
    F, H = w1.shape
    pack = lanes // F if (F <= lanes and lanes % F == 0) else 1
    eye = jnp.eye(pack, dtype=jnp.float32)
    return {
        "w1": jnp.kron(eye, w1.astype(jnp.float32)).astype(jnp.bfloat16),  # (pF, pH)
        "b1": jnp.tile(b1.reshape(1, H).astype(jnp.float32), (1, pack)),   # (1, pH)
        "w2": jnp.kron(eye, w2.astype(jnp.float32)).astype(jnp.bfloat16),  # (pH, pF)
        "b2": jnp.tile(b2.reshape(1, F).astype(jnp.float32), (1, pack)),   # (1, pF)
        "wv": jnp.kron(eye, wv.astype(jnp.float32)).astype(jnp.bfloat16),  # (pF, p)
        "bv": jnp.tile(bv.reshape(1, 1).astype(jnp.float32), (1, pack)),   # (1, p)
    }


def jointv_forward(x, packed, *, block_b=65536):
    """x: (B, features_n), any float dtype (bf16 recommended for bandwidth).
    packed: dict from pack_params().  Returns (B, 1) float32."""
    B, F = x.shape
    pack = packed["w1"].shape[0] // F
    lanes = pack * F
    row_align = 8 * pack            # packed rows must be a multiple of 8 (sublane)

    # Batch tile: big enough to amortize the ~0.35us/grid-step overhead, but
    # clamped so medium/large batches give >=2 grid steps (the "parallel"
    # batch axis then feeds both v7x TensorCores).
    if B <= 8192:
        TB = _round_up(B, row_align)
    else:
        tb_cap = max(row_align, (block_b // row_align) * row_align)
        TB = min(tb_cap, _round_up(-(-B // 2), row_align))

    Bp = _round_up(B, TB)
    if Bp != B:
        x = jnp.pad(x, ((0, Bp - B), (0, 0)))

    # Lane-pack: `pack` batch rows per 128-lane row (row-major reshape, free).
    xp = x.reshape(Bp // pack, lanes)
    TBw = TB // pack
    nb = Bp // TB

    # Double-buffered x + output tiles plus resident weights; set the scoped
    # VMEM limit explicitly so the large tile also compiles on v5e (16 MiB
    # scoped default).  Keep default double-buffering (no Buffered(3)).
    x_tile_bytes = TBw * lanes * x.dtype.itemsize
    out_tile_bytes = TBw * pack * 4
    vmem_need = 2 * (x_tile_bytes + out_tile_bytes) + (2 << 20)
    vmem_limit = int(min(max(vmem_need, 16 << 20), 64 << 20))

    out = pl.pallas_call(
        _jointv_kernel,
        out_shape=jax.ShapeDtypeStruct((Bp // pack, pack), jnp.float32),
        grid=(nb,),
        in_specs=[
            pl.BlockSpec((TBw, lanes), lambda i: (i, 0)),          # x: streamed tiles
            pl.BlockSpec(packed["w1"].shape, lambda i: (0, 0)),    # resident weights
            pl.BlockSpec(packed["b1"].shape, lambda i: (0, 0)),
            pl.BlockSpec(packed["w2"].shape, lambda i: (0, 0)),
            pl.BlockSpec(packed["b2"].shape, lambda i: (0, 0)),
            pl.BlockSpec(packed["wv"].shape, lambda i: (0, 0)),
            pl.BlockSpec(packed["bv"].shape, lambda i: (0, 0)),
        ],
        out_specs=pl.BlockSpec((TBw, pack), lambda i: (i, 0)),
        compiler_params=pltpu.CompilerParams(
            dimension_semantics=("parallel",),                     # batch over TCs
            vmem_limit_bytes=vmem_limit,
        ),
    )(xp, packed["w1"], packed["b1"], packed["w2"], packed["b2"],
      packed["wv"], packed["bv"])

    # (Bw, pack) row-major flatten restores original batch order.
    return out.reshape(-1)[:B].reshape(B, 1)


def init_params(features_n=32, seed=0):
    """Deterministic synthetic params; shapes mirror JointV.__init__ but stored
    pre-transposed as (in, out), all float32."""
    key = jax.random.PRNGKey(seed)
    k1, k2, k3, k4, k5, k6 = jax.random.split(key, 6)
    h = features_n // 2
    s1 = 1.0 / jnp.sqrt(features_n)
    s2 = 1.0 / jnp.sqrt(h)
    return {
        "w1": jax.random.uniform(k1, (features_n, h), jnp.float32, -s1, s1),
        "b1": jax.random.uniform(k2, (1, h), jnp.float32, -s1, s1),
        "w2": jax.random.uniform(k3, (h, features_n), jnp.float32, -s2, s2),
        "b2": jax.random.uniform(k4, (1, features_n), jnp.float32, -s2, s2),
        "wv": jax.random.uniform(k5, (features_n, 1), jnp.float32, -s2, s2),
        "bv": jax.random.uniform(k6, (1, 1), jnp.float32, -s2, s2),
    }


def jointv_reference_f32(x, p):
    """Full-precision reference (matches the PyTorch module in f32)."""
    h1 = jnp.maximum(x @ p["w1"] + p["b1"], 0.0)
    h2 = jnp.maximum(h1 @ p["w2"] + p["b2"], 0.0)
    return jax.nn.sigmoid(h2 @ p["wv"] + p["bv"])


def jointv_reference_matched(x, p):
    """Reference with the same bf16 matmul-input casts as the kernel."""
    w1 = p["w1"].astype(jnp.bfloat16)
    w2 = p["w2"].astype(jnp.bfloat16)
    wv = p["wv"].astype(jnp.bfloat16)
    h1 = jnp.maximum(
        jnp.dot(x.astype(jnp.bfloat16), w1,
                preferred_element_type=jnp.float32) + p["b1"], 0.0)
    h2 = jnp.maximum(
        jnp.dot(h1.astype(jnp.bfloat16), w2,
                preferred_element_type=jnp.float32) + p["b2"], 0.0)
    v = jnp.dot(h2.astype(jnp.bfloat16), wv,
                preferred_element_type=jnp.float32) + p["bv"]
    return jax.nn.sigmoid(v)


if __name__ == "__main__":
    features_n = 32
    batch = 8
    x = jax.random.normal(jax.random.PRNGKey(0), (batch, features_n), jnp.float32)
    raw = init_params(features_n=features_n, seed=0)
    packed = pack_params(raw)

    out = jointv_forward(x, packed)
    out = jax.block_until_ready(out)
    assert out.shape == (batch, 1), out.shape

    ref_m = jointv_reference_matched(x, raw)
    ref_f = jointv_reference_f32(x, raw)
    assert jnp.allclose(out, ref_m, atol=1e-4, rtol=0), "mismatch vs matched (bf16) reference"
    assert jnp.allclose(out, ref_f, atol=2e-2, rtol=0), "mismatch vs f32 reference"
    print("KERNEL_OK")
</pallas_src>

<mosaic_0001>
module attributes {stable_mosaic.version = 11 : i64} {
  func.func @_jointv_kernel(%arg0: i32, %arg1: memref<8x128xf32, #tpu.memory_space<vmem>>, %arg2: memref<128x64xbf16, #tpu.memory_space<vmem>>, %arg3: memref<1x64xf32, #tpu.memory_space<vmem>>, %arg4: memref<64x128xbf16, #tpu.memory_space<vmem>>, %arg5: memref<1x128xf32, #tpu.memory_space<vmem>>, %arg6: memref<128x4xbf16, #tpu.memory_space<vmem>>, %arg7: memref<1x4xf32, #tpu.memory_space<vmem>>, %arg8: memref<8x4xf32, #tpu.memory_space<vmem>>) attributes {dimension_semantics = [#tpu.dimension_semantics<parallel>], iteration_bounds = array<i64: 1>, scalar_prefetch = 0 : i64, scratch_operands = 0 : i64, tpu.core_type = #tpu.core_type<tc>, window_params = [{transform_indices = @transform_0, window_bounds = array<i64: 8, 128>}, {pipeline_mode = #tpu.pipeline_mode<synchronous>, transform_indices = @transform_1, window_bounds = array<i64: 128, 64>}, {pipeline_mode = #tpu.pipeline_mode<synchronous>, transform_indices = @transform_2, window_bounds = array<i64: 1, 64>}, {pipeline_mode = #tpu.pipeline_mode<synchronous>, transform_indices = @transform_3, window_bounds = array<i64: 64, 128>}, {pipeline_mode = #tpu.pipeline_mode<synchronous>, transform_indices = @transform_4, window_bounds = array<i64: 1, 128>}, {pipeline_mode = #tpu.pipeline_mode<synchronous>, transform_indices = @transform_5, window_bounds = array<i64: 128, 4>}, {pipeline_mode = #tpu.pipeline_mode<synchronous>, transform_indices = @transform_6, window_bounds = array<i64: 1, 4>}, {transform_indices = @transform_7, window_bounds = array<i64: 8, 4>}]} {
    %c0 = arith.constant 0 : index
    %c0_0 = arith.constant 0 : index
    %0 = vector.load %arg1[%c0, %c0_0] : memref<8x128xf32, #tpu.memory_space<vmem>>, vector<8x128xf32>
    %1 = arith.truncf %0 : vector<8x128xf32> to vector<8x128xbf16>
    %c0_1 = arith.constant 0 : index
    %c0_2 = arith.constant 0 : index
    %2 = vector.load %arg2[%c0_1, %c0_2] : memref<128x64xbf16, #tpu.memory_space<vmem>>, vector<128x64xbf16>
    %cst = arith.constant dense<0.000000e+00> : vector<8x64xf32>
    %3 = tpu.matmul %1, %2, %cst {dimension_numbers = #tpu.dot_dimension_numbers<[1], [0], [0], [1], [0, 0, 1, 1], [], []>} : vector<8x128xbf16>, vector<128x64xbf16>, vector<8x64xf32> -> vector<8x64xf32>
    %c0_3 = arith.constant 0 : index
    %c0_4 = arith.constant 0 : index
    %4 = vector.load %arg3[%c0_3, %c0_4] : memref<1x64xf32, #tpu.memory_space<vmem>>, vector<1x64xf32>
    %5 = vector.broadcast %4 : vector<1x64xf32> to vector<8x64xf32>
    %6 = arith.addf %3, %5 : vector<8x64xf32>
    %cst_5 = arith.constant 0.000000e+00 : f32
    %7 = vector.broadcast %cst_5 : f32 to vector<8x64xf32>
    %8 = arith.maximumf %6, %7 : vector<8x64xf32>
    %9 = arith.truncf %8 : vector<8x64xf32> to vector<8x64xbf16>
    %c0_6 = arith.constant 0 : index
    %c0_7 = arith.constant 0 : index
    %10 = vector.load %arg4[%c0_6, %c0_7] : memref<64x128xbf16, #tpu.memory_space<vmem>>, vector<64x128xbf16>
    %cst_8 = arith.constant dense<0.000000e+00> : vector<8x128xf32>
    %11 = tpu.matmul %9, %10, %cst_8 {dimension_numbers = #tpu.dot_dimension_numbers<[1], [0], [0], [1], [0, 0, 1, 1], [], []>} : vector<8x64xbf16>, vector<64x128xbf16>, vector<8x128xf32> -> vector<8x128xf32>
    %c0_9 = arith.constant 0 : index
    %c0_10 = arith.constant 0 : index
    %12 = vector.load %arg5[%c0_9, %c0_10] : memref<1x128xf32, #tpu.memory_space<vmem>>, vector<1x128xf32>
    %13 = vector.broadcast %12 : vector<1x128xf32> to vector<8x128xf32>
    %14 = arith.addf %11, %13 : vector<8x128xf32>
    %cst_11 = arith.constant 0.000000e+00 : f32
    %15 = vector.broadcast %cst_11 : f32 to vector<8x128xf32>
    %16 = arith.maximumf %14, %15 : vector<8x128xf32>
    %17 = arith.truncf %16 : vector<8x128xf32> to vector<8x128xbf16>
    %c0_12 = arith.constant 0 : index
    %c0_13 = arith.constant 0 : index
    %18 = vector.load %arg6[%c0_12, %c0_13] : memref<128x4xbf16, #tpu.memory_space<vmem>>, vector<128x4xbf16>
    %cst_14 = arith.constant dense<0.000000e+00> : vector<8x4xf32>
    %19 = tpu.matmul %17, %18, %cst_14 {dimension_numbers = #tpu.dot_dimension_numbers<[1], [0], [0], [1], [0, 0, 1, 1], [], []>} : vector<8x128xbf16>, vector<128x4xbf16>, vector<8x4xf32> -> vector<8x4xf32>
    %c0_15 = arith.constant 0 : index
    %c0_16 = arith.constant 0 : index
    %20 = vector.load %arg7[%c0_15, %c0_16] : memref<1x4xf32, #tpu.memory_space<vmem>>, vector<1x4xf32>
    %21 = vector.broadcast %20 : vector<1x4xf32> to vector<8x4xf32>
    %22 = arith.addf %19, %21 : vector<8x4xf32>
    %23 = arith.negf %22 : vector<8x4xf32>
    %24 = math.exp %23 : vector<8x4xf32>
    %cst_17 = arith.constant 1.000000e+00 : f32
    %25 = vector.broadcast %cst_17 : f32 to vector<8x4xf32>
    %26 = arith.addf %25, %24 : vector<8x4xf32>
    %27 = arith.divf %25, %26 : vector<8x4xf32>
    %c0_18 = arith.constant 0 : index
    %c0_19 = arith.constant 0 : index
    %28 = vector.load %arg8[%c0_18, %c0_19] : memref<8x4xf32, #tpu.memory_space<vmem>>, vector<8x4xf32>
    tpu.vector_store %arg8[%c0_18, %c0_19], %27 {strides = array<i32>} : memref<8x4xf32, #tpu.memory_space<vmem>>, vector<8x4xf32>,
    return
  }
  func.func @transform_0(%arg0: i32) -> (i32, i32) {
    %c0_i32 = arith.constant 0 : i32
    %c0_i32_0 = arith.constant 0 : i32
    return %arg0, %c0_i32 : i32, i32
  }
  func.func @transform_1(%arg0: i32) -> (i32, i32) {
    %c0_i32 = arith.constant 0 : i32
    %c0_i32_0 = arith.constant 0 : i32
    %c0_i32_1 = arith.constant 0 : i32
    return %c0_i32, %c0_i32_0 : i32, i32
  }
  func.func @transform_2(%arg0: i32) -> (i32, i32) {
    %c0_i32 = arith.constant 0 : i32
    %c0_i32_0 = arith.constant 0 : i32
    %c0_i32_1 = arith.constant 0 : i32
    return %c0_i32, %c0_i32_0 : i32, i32
  }
  func.func @transform_3(%arg0: i32) -> (i32, i32) {
    %c0_i32 = arith.constant 0 : i32
    %c0_i32_0 = arith.constant 0 : i32
    %c0_i32_1 = arith.constant 0 : i32
    return %c0_i32, %c0_i32_0 : i32, i32
  }
  func.func @transform_4(%arg0: i32) -> (i32, i32) {
    %c0_i32 = arith.constant 0 : i32
    %c0_i32_0 = arith.constant 0 : i32
    %c0_i32_1 = arith.constant 0 : i32
    return %c0_i32, %c0_i32_0 : i32, i32
  }
  func.func @transform_5(%arg0: i32) -> (i32, i32) {
    %c0_i32 = arith.constant 0 : i32
    %c0_i32_0 = arith.constant 0 : i32
    %c0_i32_1 = arith.constant 0 : i32
    return %c0_i32, %c0_i32_0 : i32, i32
  }
  func.func @transform_6(%arg0: i32) -> (i32, i32) {
    %c0_i32 = arith.constant 0 : i32
    %c0_i32_0 = arith.constant 0 : i32
    %c0_i32_1 = arith.constant 0 : i32
    return %c0_i32, %c0_i32_0 : i32, i32
  }
  func.func @transform_7(%arg0: i32) -> (i32, i32) {
    %c0_i32 = arith.constant 0 : i32
    %c0_i32_0 = arith.constant 0 : i32
    return %arg0, %c0_i32 : i32, i32
  }
}

</mosaic_0001>

<bundles_post_ra>
// kernel: tpu_custom_call.1
= control target key start
LH: loop header
LB: loop body
LE: loop exit
PB: predicated region body
PF: predicated region fallthrough
CT: control target
= control target key end

     0   :  { %v476_v0 = vmov 0.0   ;;  %vm477_vm0 = vmmov 0   ;;  %vm181_vm1 = vcmask 523264   ;;  %vm344_vm2 = vcmask 31744   ;;  %s619_s1 = inlined_call_operand.vmem [shape: bf16[128,64], index: 1, kind: input, shape index: {}]   ;;  %s620_s3 = inlined_call_operand.vmem [shape: bf16[64,128], index: 3, kind: input, shape index: {}]   ;;  %s621_s0 = inlined_call_operand.vmem [shape: f32[8,128], index: 0, kind: input, shape index: {}]   ;;  %s622_s5 = inlined_call_operand.vmem [shape: bf16[128,4], index: 5, kind: input, shape index: {}]   ;;  %s623_s2 = inlined_call_operand.vmem [shape: f32[1,64], index: 2, kind: input, shape index: {}]   ;;  %s624_s4 = inlined_call_operand.vmem [shape: f32[1,128], index: 4, kind: input, shape index: {}]   ;;  %s625_s6 = inlined_call_operand.vmem [shape: f32[1,4], index: 6, kind: input, shape index: {}]   ;;  %s626_s7 = inlined_call_operand.vmem [shape: f32[8,4], index: 7, kind: output, shape index: {}]  }
   0x1   :  { %398 = vmatprep.subr.bf16.mxu0 %v476_v0  ;;  %v452_v1 = vld [vmem:[%s619_s1 + $0x38] sm:$0xff]   ;;  %414 = vmatprep.mubr.msk.bf16.mxu0 %vm477_vm0, %v476_v0  ;;  %v453_v2 = vld [vmem:[%s619_s1 + $0x30] sm:$0xff]   ;;  %v454_v3 = vld [vmem:[%s619_s1 + $0x28] sm:$0xff]  }
   0x2   :  { %418 = vmatprep.subr.bf16.mxu1 %v476_v0  ;;  %426 = vmatprep.mubr.msk.bf16.mxu1 %vm477_vm0, %v476_v0  ;;  %v460_v4 = vld [vmem:[%s620_s3 + $0x18] sm:$0xff]   ;;  %v455_v5 = vld [vmem:[%s619_s1 + $0x20] sm:$0xff]   ;;  %v461_v6 = vld [vmem:[%s620_s3 + $0x10] sm:$0xff]  }
   0x3   :  { %399 = vmatpush3.bf16.msra.mxu0 %v452_v1  ;;  %419 = vmatpush3.bf16.msra.mxu1 %v460_v4  ;;  %v456_v7 = vld [vmem:[%s619_s1 + $0x18] sm:$0xff]   ;;  %v457_v8 = vld [vmem:[%s619_s1 + $0x10] sm:$0xff]   ;;  %v458_v9 = vld [vmem:[%s619_s1 + $0x8] sm:$0xff]  }
   0x4   :  { %400 = vmatprep.subr.bf16.mxu0 %v476_v0  ;;  %420 = vmatprep.subr.bf16.mxu1 %v476_v0  ;;  %v459_v10 = vld [vmem:[%s619_s1] sm:$0xff]   ;;  %v462_v13 = vld [vmem:[%s620_s3 + $0x8] sm:$0xff]   ;;  %v464_v21 = vld [vmem:[%s622_s5 + $0x38] sm:$0xff]  }
   0x5   :  { %v27_v11 = vld [vmem:[%s621_s0] sm:$0xff]  ;;  %v465_v24 = vld [vmem:[%s622_s5 + $0x30] sm:$0xff]   ;;  %v466_v25 = vld [vmem:[%s622_s5 + $0x28] sm:$0xff]  }
   0x6   :  { %v28_v12 = vpack.c.bf16 %v27_v11, %v27_v11  ;;  %v463_v14 = vld [vmem:[%s620_s3] sm:$0xff]   ;;  %v468_v27 = vld [vmem:[%s622_s5 + $0x18] sm:$0xff]   ;;  %v469_v28 = vld [vmem:[%s622_s5 + $0x10] sm:$0xff]  }
   0x7   :  { %401 = vmatpush3.bf16.msra.mxu0 %v453_v2  ;;  %421 = vmatpush3.bf16.msra.mxu1 %v461_v6  ;;  %v350_v15 = vld [vmem:[%s623_s2] ss:$0 sm:$0xff]  ;;  %v470_v29 = vld [vmem:[%s622_s5 + $0x8] sm:$0xff]  }
   0x8   :  { %402 = vmatprep.subr.bf16.mxu0 %v476_v0  ;;  %422 = vmatprep.subr.bf16.mxu1 %v476_v0  ;;  %v467_v26 = vld [vmem:[%s622_s5 + $0x20] sm:$0xff]  }
   0x9   :  { %v471_v30 = vld [vmem:[%s622_s5] sm:$0xff]  }
   0xa   :  { %v359_v31 = vld [vmem:[%s624_s4] ss:$0 sm:$0xff] }
   0xb   :  { %403 = vmatpush3.bf16.msra.mxu0 %v454_v3  ;;  %423 = vmatpush3.bf16.msra.mxu1 %v462_v13  ;;  %v365_v39 = vld [vmem:[%s625_s6] ss:$0 sm:$0xff] }
   0xc   :  { %404 = vmatprep.subr.bf16.mxu0 %v476_v0  ;;  %424 = vmatprep.subr.bf16.mxu1 %v476_v0 }
   0xf   :  { %405 = vmatpush3.bf16.msra.mxu0 %v455_v5  ;;  %425 = vmatpush3.bf16.msra.mxu1 %v463_v14 }
  0x10   :  { %406 = vmatprep.subr.bf16.mxu0 %v476_v0  ;;  %430 = vmatprep.subr.bf16.mxu1 %v476_v0 }
  0x13   :  { %407 = vmatpush3.bf16.msra.mxu0 %v456_v7 }
  0x14   :  { %408 = vmatprep.subr.bf16.mxu0 %v476_v0 }
  0x17   :  { %409 = vmatpush3.bf16.msra.mxu0 %v457_v8 }
  0x18   :  { %410 = vmatprep.subr.bf16.mxu0 %v476_v0 }
  0x1b   :  { %411 = vmatpush3.bf16.msra.mxu0 %v458_v9 }
  0x1c   :  { %412 = vmatprep.subr.bf16.mxu0 %v476_v0 }
  0x1f   :  { %413 = vmatpush3.bf16.msra.mxu0 %v459_v10 }
  0x22   :  { %415 = vmatmul.mubr.bf16.vlgmr.msra.gmra.mxu0 %v28_v12 }
  0xe2   :  { %v134_v16 = vpop.f32.mrf.mxu0 }
  0xe3   :  { %v135_v17 = vadd.f32 %v350_v15, %v134_v16 }
  0xe4   :  { %v416_v18 = vpop.f32.mrf.mxu0 }
  0xe5   :  { %v140_v19 = vmax.f32 %v135_v17, 0.0 }
  0xe6   :  { %v137_v20 = vpop.f32.mrf.mxu0 }
  0xe7   :  { %v141_v22 = vpack.c.bf16 %v140_v19, %v140_v19 }
  0xe8   :  { %v417_v23 = vpop.f32.mrf.mxu0 }
  0xe9   :  { %427 = vmatmul.mubr.msk.bf16.vlgmr.msra.gmra.mxu1 %vm181_vm1, %v141_v22 }
  0xea   :  { %431 = vmatpush3.bf16.msra.mxu1 %v464_v21  ;;  %446 = vmatprep.mubr.msk.bf16.mxu1 %vm477_vm0, %v476_v0 }
  0xeb   :  { %432 = vmatprep.subr.bf16.mxu1 %v476_v0 }
  0xee   :  { %433 = vmatpush3.bf16.msra.mxu1 %v465_v24 }
  0xef   :  { %434 = vmatprep.subr.bf16.mxu1 %v476_v0 }
  0xf2   :  { %435 = vmatpush3.bf16.msra.mxu1 %v466_v25 }
  0xf3   :  { %436 = vmatprep.subr.bf16.mxu1 %v476_v0 }
  0xf6   :  { %437 = vmatpush3.bf16.msra.mxu1 %v467_v26 }
  0xf7   :  { %438 = vmatprep.subr.bf16.mxu1 %v476_v0 }
  0xfa   :  { %439 = vmatpush3.bf16.msra.mxu1 %v468_v27 }
  0xfb   :  { %440 = vmatprep.subr.bf16.mxu1 %v476_v0 }
  0xfe   :  { %441 = vmatpush3.bf16.msra.mxu1 %v469_v28 }
  0xff   :  { %442 = vmatprep.subr.bf16.mxu1 %v476_v0 }
 0x102   :  { %443 = vmatpush3.bf16.msra.mxu1 %v470_v29 }
 0x103   :  { %444 = vmatprep.subr.bf16.mxu1 %v476_v0 }
 0x106   :  { %445 = vmatpush3.bf16.msra.mxu1 %v471_v30 }
 0x1a9   :  { %v219_v32 = vpop.f32.mrf.mxu1 }
 0x1aa   :  { %v220_v33 = vadd.f32 %v359_v31, %v219_v32 }
 0x1ab   :  { %v428_v34 = vpop.f32.mrf.mxu1 }
 0x1ac   :  { %v225_v35 = vmax.f32 %v220_v33, 0.0 }
 0x1ad   :  { %v222_v36 = vpop.f32.mrf.mxu1 }
 0x1ae   :  { %v226_v37 = vpack.c.bf16 %v225_v35, %v225_v35 }
 0x1af   :  { %v429_v38 = vpop.f32.mrf.mxu1 }
 0x1b0   :  { %447 = vmatmul.mubr.bf16.vlgmr.msra.gmra.mxu1 %v226_v37 }
 0x270   :  { %v332_v40 = vpop.f32.mrf.mxu1 }
 0x271   :  { %v333_v41 = vadd.f32 %v365_v39, %v332_v40 }
 0x272   :  { %v448_v42 = vpop.f32.mrf.mxu1 }
 0x273   :  { %v374_v43 = vmul.f32 -1.442695, %v333_v41 }
 0x274   :  { %v335_v44 = vpop.f32.mrf.mxu1 }
 0x275   :  { %472 = vpow2.f32 %v374_v43 }
 0x276   :  { %v449_v45 = vpop.f32.mrf.mxu1 }
 0x282   :  { %v473_v46 = vpop.eup %472 }
 0x283   :  { %v341_v47 = vadd.f32 1.0, %v473_v46 }
 0x285   :  { %474 = vrcp.f32 %v341_v47 }
 0x292   :  { %v475_v48 = vpop.eup %474 }
 0x293   :  { %345 = vst.msk [vmem:[%s626_s7] sm:$0xff] %vm344_vm2, %v475_v48 }

</bundles_post_ra>
